<compile_context>
chip_gen: v7x
topology: tpu7x:2x2x1
jax: 0.10.0
libtpu: 0.0.40
codegen_flags: <defaults>
</compile_context>

<pallas_src>
import functools
import math

import jax
import jax.numpy as jnp
from jax.experimental import pallas as pl
from jax.experimental.pallas import tpu as pltpu


_VMEM_LIMIT_BYTES = None  # resolved lazily per-generation


def _vmem_limit_bytes():
    try:
        info = pltpu.get_tpu_info()
        cap = getattr(info, "vmem_capacity_bytes", None) or (64 * 1024 * 1024)
    except Exception:
        cap = 64 * 1024 * 1024
    # Leave pipelining headroom: 3/4 of physical, capped at 96 MiB
    # (v5e/v6e: 96 MiB of 128; v7x: 48 MiB of 64).
    return int(min(cap * 3 // 4, 96 * 1024 * 1024))


def _compiler_params(n_axes):
    global _VMEM_LIMIT_BYTES
    if _VMEM_LIMIT_BYTES is None:
        _VMEM_LIMIT_BYTES = _vmem_limit_bytes()
    return pltpu.CompilerParams(
        dimension_semantics=("parallel",) * n_axes,
        vmem_limit_bytes=_VMEM_LIMIT_BYTES,
    )


def _round_up(x, m):
    return ((x + m - 1) // m) * m


def _row_tile(m, target=256):
    """Fixed row tile (grid uses pl.cdiv); clamped so tiny M doesn't allocate an
    oversized block; always a multiple of 8 sublanes."""
    return min(target, _round_up(m, 8))


def _col_tile(n, target=256):
    """N-tile the weight/output when N is large (keeps resident weight slabs
    small, 256-wide tiles fill the 256x256 MXU on v6e/v7x); else full width."""
    return target if (n > target and n % target == 0) else n


# --------------------------------------------------------------------------
# Pallas kernels
# --------------------------------------------------------------------------

def _layernorm_rows(x, g, beta, eps):
    mean = jnp.mean(x, axis=-1, keepdims=True)
    var = jnp.mean(jnp.square(x - mean), axis=-1, keepdims=True)
    xn = (x - mean) * jax.lax.rsqrt(var + eps)
    return xn * g + beta


def _linear_kernel(x_ref, w_ref, b_ref, o_ref, *, activation):
    # bf16 MXU operands (weights are already bf16), f32 accumulate.
    y = jnp.dot(x_ref[...].astype(jnp.bfloat16), w_ref[...],
                preferred_element_type=jnp.float32)
    y = y + b_ref[...].astype(jnp.float32)
    if activation == "gelu":
        y = jax.nn.gelu(y, approximate=True)
    elif activation == "tanh":
        y = jnp.tanh(y)
    o_ref[...] = y.astype(o_ref.dtype)


def linear_pallas(x, w, b, activation=None, tile_m=256, out_dtype=jnp.float32):
    """y = act(x @ w + b); x:(M,K), w:(K,N) bf16, b:(1,N) -> (M,N)."""
    M, K = x.shape
    _, N = w.shape
    tm = _row_tile(M, tile_m)
    tn = _col_tile(N)
    return pl.pallas_call(
        functools.partial(_linear_kernel, activation=activation),
        out_shape=jax.ShapeDtypeStruct((M, N), out_dtype),
        grid=(pl.cdiv(M, tm), pl.cdiv(N, tn)),
        in_specs=[
            pl.BlockSpec((tm, K), lambda i, j: (i, 0)),
            pl.BlockSpec((K, tn), lambda i, j: (0, j)),
            pl.BlockSpec((1, tn), lambda i, j: (0, j)),
        ],
        out_specs=pl.BlockSpec((tm, tn), lambda i, j: (i, j)),
        compiler_params=_compiler_params(2),
    )(x, w, b)


def _linear_residual_kernel(x_ref, w_ref, b_ref, r_ref, o_ref):
    y = jnp.dot(x_ref[...].astype(jnp.bfloat16), w_ref[...],
                preferred_element_type=jnp.float32)
    y = y + b_ref[...].astype(jnp.float32) + r_ref[...].astype(jnp.float32)
    o_ref[...] = y.astype(o_ref.dtype)


def linear_residual_pallas(x, w, b, res, tile_m=256):
    """y = res + x @ w + b (residual fused into the projection matmul)."""
    M, K = x.shape
    _, N = w.shape
    tm = _row_tile(M, tile_m)
    tn = _col_tile(N)
    return pl.pallas_call(
        _linear_residual_kernel,
        out_shape=jax.ShapeDtypeStruct((M, N), jnp.float32),
        grid=(pl.cdiv(M, tm), pl.cdiv(N, tn)),
        in_specs=[
            pl.BlockSpec((tm, K), lambda i, j: (i, 0)),
            pl.BlockSpec((K, tn), lambda i, j: (0, j)),
            pl.BlockSpec((1, tn), lambda i, j: (0, j)),
            pl.BlockSpec((tm, tn), lambda i, j: (i, j)),
        ],
        out_specs=pl.BlockSpec((tm, tn), lambda i, j: (i, j)),
        compiler_params=_compiler_params(2),
    )(x, w, b, res)


def _ln_linear_kernel(x_ref, g_ref, beta_ref, w_ref, b_ref, o_ref, *, eps,
                      activation):
    x = x_ref[...].astype(jnp.float32)
    xn = _layernorm_rows(x, g_ref[...].astype(jnp.float32),
                         beta_ref[...].astype(jnp.float32), eps)
    y = jnp.dot(xn.astype(jnp.bfloat16), w_ref[...],
                preferred_element_type=jnp.float32)
    y = y + b_ref[...].astype(jnp.float32)
    if activation == "gelu":
        y = jax.nn.gelu(y, approximate=True)
    o_ref[...] = y.astype(o_ref.dtype)


def ln_linear_pallas(x, gamma, beta, w, b, activation=None, eps=1e-5,
                     tile_m=256, out_dtype=jnp.float32):
    """Fused LayerNorm -> Linear (-> activation); x:(M,D), w:(D,N) bf16."""
    M, D = x.shape
    _, N = w.shape
    tm = _row_tile(M, tile_m)
    tn = _col_tile(N)
    return pl.pallas_call(
        functools.partial(_ln_linear_kernel, eps=eps, activation=activation),
        out_shape=jax.ShapeDtypeStruct((M, N), out_dtype),
        grid=(pl.cdiv(M, tm), pl.cdiv(N, tn)),
        in_specs=[
            pl.BlockSpec((tm, D), lambda i, j: (i, 0)),
            pl.BlockSpec((1, D), lambda i, j: (0, 0)),
            pl.BlockSpec((1, D), lambda i, j: (0, 0)),
            pl.BlockSpec((D, tn), lambda i, j: (0, j)),
            pl.BlockSpec((1, tn), lambda i, j: (0, j)),
        ],
        out_specs=pl.BlockSpec((tm, tn), lambda i, j: (i, j)),
        compiler_params=_compiler_params(2),
    )(x, gamma, beta, w, b)


def _ln_qkv_kernel(x_ref, g_ref, beta_ref, w_ref, b_ref, q_ref, k_ref, v_ref,
                   *, eps, d):
    x = x_ref[...].astype(jnp.float32)
    xn = _layernorm_rows(x, g_ref[...].astype(jnp.float32),
                         beta_ref[...].astype(jnp.float32), eps)
    y = jnp.dot(xn.astype(jnp.bfloat16), w_ref[...],
                preferred_element_type=jnp.float32)
    y = y + b_ref[...].astype(jnp.float32)
    q_ref[...] = y[:, 0 * d:1 * d].astype(q_ref.dtype)
    k_ref[...] = y[:, 1 * d:2 * d].astype(k_ref.dtype)
    v_ref[...] = y[:, 2 * d:3 * d].astype(v_ref.dtype)


def ln_qkv_pallas(x, gamma, beta, w, b, eps=1e-5, tile_m=256):
    """Fused LayerNorm -> QKV projection, emitting bf16 Q/K/V as separate
    lane-major outputs (heads stay folded in the last dim)."""
    # TODO(synk): N-tile the QKV weight as well for production D (~1024).
    M, D = x.shape
    threeD = w.shape[1]
    dout = threeD // 3
    tm = _row_tile(M, tile_m)
    q, k, v = pl.pallas_call(
        functools.partial(_ln_qkv_kernel, eps=eps, d=dout),
        out_shape=tuple(jax.ShapeDtypeStruct((M, dout), jnp.bfloat16)
                        for _ in range(3)),
        grid=(pl.cdiv(M, tm),),
        in_specs=[
            pl.BlockSpec((tm, D), lambda i: (i, 0)),
            pl.BlockSpec((1, D), lambda i: (0, 0)),
            pl.BlockSpec((1, D), lambda i: (0, 0)),
            pl.BlockSpec((D, threeD), lambda i: (0, 0)),
            pl.BlockSpec((1, threeD), lambda i: (0, 0)),
        ],
        out_specs=[
            pl.BlockSpec((tm, dout), lambda i: (i, 0)),
            pl.BlockSpec((tm, dout), lambda i: (i, 0)),
            pl.BlockSpec((tm, dout), lambda i: (i, 0)),
        ],
        compiler_params=_compiler_params(1),
    )(x, gamma, beta, w, b)
    return q, k, v


def _patch_pool_ln_kernel(x_ref, w_ref, b_ref, g_ref, beta_ref, o_ref, *,
                          num_patches, eps):
    """Patch-embed matmul + per-frame mean-pool + backbone LayerNorm fused:
    only the pooled (frames, D) result is written back to HBM."""
    y = jnp.dot(x_ref[...].astype(jnp.bfloat16), w_ref[...],
                preferred_element_type=jnp.float32)
    y = y + b_ref[...].astype(jnp.float32)
    tf = y.shape[0] // num_patches
    pooled = jnp.mean(y.reshape(tf, num_patches, y.shape[-1]), axis=1)
    out = _layernorm_rows(pooled, g_ref[...].astype(jnp.float32),
                          beta_ref[...].astype(jnp.float32), eps)
    o_ref[...] = out.astype(o_ref.dtype)


def patch_embed_pool_ln_pallas(patches, w, b, gamma, beta, *, num_patches,
                               eps=1e-5):
    """patches: (num_frames*num_patches, patch_dim) -> pooled+LN (num_frames, D)."""
    rows, _ = patches.shape
    num_frames = rows // num_patches
    D = w.shape[1]
    if num_frames % 8 == 0:
        tf = 8
        while (tf * 2 <= num_frames and num_frames % (tf * 2) == 0
               and tf * num_patches < 256):
            tf *= 2
    else:
        tf = num_frames  # single block; row dims equal the full array dims
    grid = num_frames // tf
    return pl.pallas_call(
        functools.partial(_patch_pool_ln_kernel, num_patches=num_patches,
                          eps=eps),
        out_shape=jax.ShapeDtypeStruct((num_frames, D), jnp.float32),
        grid=(grid,),
        in_specs=[
            pl.BlockSpec((tf * num_patches, patches.shape[1]),
                         lambda i: (i, 0)),
            pl.BlockSpec((patches.shape[1], D), lambda i: (0, 0)),
            pl.BlockSpec((1, D), lambda i: (0, 0)),
            pl.BlockSpec((1, D), lambda i: (0, 0)),
            pl.BlockSpec((1, D), lambda i: (0, 0)),
        ],
        out_specs=pl.BlockSpec((tf, D), lambda i: (i, 0)),
        compiler_params=_compiler_params(1),
    )(patches, w, b, gamma, beta)


def _attn_kernel(q_ref, k_ref, v_ref, o_ref, *, scale, dh, heads_per_group,
                 num_lookback, local_range, seq_len):
    """One (batch, head-group) per grid step.  The banded lookback / lookahead
    + global-CLS mask is rebuilt in-kernel as two additive masks (no HBM mask
    traffic); each head's output is stored as soon as it is produced so live
    ranges stay bounded."""
    g = pl.program_id(1)
    S = seq_len

    qg = q_ref[0]            # (S, gw) bf16, heads folded
    kg = k_ref[0]
    vg = v_ref[0]

    ii = jax.lax.broadcasted_iota(jnp.int32, (S, S), 0)
    jj = jax.lax.broadcasted_iota(jnp.int32, (S, S), 1)
    delta = jj - ii
    is_cls = (ii == 0) | (ii == S - 1) | (jj == 0) | (jj == S - 1)
    neg = jnp.float32(-1e9)
    mask_back = jnp.where(is_cls | ((delta <= 0) & (delta >= -local_range)),
                          jnp.float32(0.0), neg)
    mask_ahead = jnp.where(is_cls | ((delta >= 0) & (delta <= local_range)),
                           jnp.float32(0.0), neg)

    contract_last = (((1,), (1,)), ((), ()))      # q @ k^T without transposing k
    for hh in range(heads_per_group):             # static unroll over the group
        h_global = g * heads_per_group + hh
        is_back = h_global < num_lookback
        qh = qg[:, hh * dh:(hh + 1) * dh]
        kh = kg[:, hh * dh:(hh + 1) * dh]
        vh = vg[:, hh * dh:(hh + 1) * dh]
        s = jax.lax.dot_general(qh, kh, contract_last,
                                preferred_element_type=jnp.float32)
        s = s * scale + jnp.where(is_back, mask_back, mask_ahead)
        s = s - jnp.max(s, axis=-1, keepdims=True)
        p = jnp.exp(s)
        p = p * pl.reciprocal(jnp.sum(p, axis=-1, keepdims=True), approx=True)
        out_h = jnp.dot(p.astype(jnp.bfloat16), vh,
                        preferred_element_type=jnp.float32)
        o_ref[0, :, hh * dh:(hh + 1) * dh] = out_h.astype(o_ref.dtype)


def attention_pallas(q, k, v, *, num_heads, num_lookback, local_range):
    """Masked multi-head attention; q/k/v: (B, S, D) bf16, heads folded in D.
    Output is bf16 (consumed straight by the bf16 out-proj matmul)."""
    # TODO(synk): key-blocked online-softmax (flash) loop for S beyond ~1k.
    B, S, D = q.shape
    dh = D // num_heads
    scale = 1.0 / math.sqrt(dh)
    # Smallest head group whose folded width is lane-dense (multiple of 128
    # lanes), so stores stay unmasked and v7x's two cores both get grid steps.
    gs = num_heads
    for d in range(1, num_heads + 1):
        if num_heads % d == 0 and (d * dh) % 128 == 0:
            gs = d
            break
    gw = gs * dh
    n_groups = num_heads // gs
    return pl.pallas_call(
        functools.partial(_attn_kernel, scale=scale, dh=dh,
                          heads_per_group=gs, num_lookback=num_lookback,
                          local_range=local_range, seq_len=S),
        out_shape=jax.ShapeDtypeStruct((B, S, D), jnp.bfloat16),
        grid=(B, n_groups),
        in_specs=[
            pl.BlockSpec((1, S, gw), lambda b, g: (b, 0, g)),
            pl.BlockSpec((1, S, gw), lambda b, g: (b, 0, g)),
            pl.BlockSpec((1, S, gw), lambda b, g: (b, 0, g)),
        ],
        out_specs=pl.BlockSpec((1, S, gw), lambda b, g: (b, 0, g)),
        compiler_params=_compiler_params(2),
    )(q, k, v)


# --------------------------------------------------------------------------
# Model glue (parameter init, forward orchestration) — plain JAX
# --------------------------------------------------------------------------

def init_params(key, *, channels, patch, embed_dim, num_heads, num_layers,
                mlp_ratio):
    D = embed_dim
    patch_dim = channels * patch * patch
    k = jax.random.split(key, 8 + 4 * num_layers)
    std = 0.02

    def nrm(kk, shape, dtype=jnp.bfloat16):
        # Weights are stored bf16 so the MXU operands arrive bf16 at the
        # pallas_call boundary (half the DMA bytes / VMEM residency).
        return (jax.random.normal(kk, shape, jnp.float32) * std).astype(dtype)

    params = {
        "patch": patch,
        "num_heads": num_heads,
        "patch_w": nrm(k[0], (patch_dim, D)),
        "patch_b": jnp.zeros((1, D), jnp.float32),
        "bb_ln_g": jnp.ones((1, D), jnp.float32),
        "bb_ln_b": jnp.zeros((1, D), jnp.float32),
        "cls_start": nrm(k[1], (D,), jnp.float32),
        "cls_end": nrm(k[2], (D,), jnp.float32),
        "pool_w": nrm(k[3], (2 * D, D)),
        "pool_b": jnp.zeros((1, D), jnp.float32),
        "layers": [],
    }
    for l in range(num_layers):
        kl = jax.random.split(k[8 + l], 4)
        params["layers"].append({
            "ln1_g": jnp.ones((1, D), jnp.float32),
            "ln1_b": jnp.zeros((1, D), jnp.float32),
            "qkv_w": nrm(kl[0], (D, 3 * D)),
            "qkv_b": jnp.zeros((1, 3 * D), jnp.float32),
            "out_w": nrm(kl[1], (D, D)),
            "out_b": jnp.zeros((1, D), jnp.float32),
            "ln2_g": jnp.ones((1, D), jnp.float32),
            "ln2_b": jnp.zeros((1, D), jnp.float32),
            "fc1_w": nrm(kl[2], (D, mlp_ratio * D)),
            "fc1_b": jnp.zeros((1, mlp_ratio * D), jnp.float32),
            "fc2_w": nrm(kl[3], (mlp_ratio * D, D)),
            "fc2_b": jnp.zeros((1, D), jnp.float32),
        })
    return params


def bt_transformer_layer(p, h, *, num_heads, num_lookback, local_range):
    B, S, D = h.shape
    h2d = h.reshape(B * S, D)

    # Fused LN -> QKV (bf16 Q/K/V, heads folded in the last dim).
    q, k, v = ln_qkv_pallas(h2d, p["ln1_g"], p["ln1_b"], p["qkv_w"], p["qkv_b"])
    q = q.reshape(B, S, D)
    k = k.reshape(B, S, D)
    v = v.reshape(B, S, D)

    attn = attention_pallas(q, k, v, num_heads=num_heads,
                            num_lookback=num_lookback, local_range=local_range)

    # out-proj with residual add fused into the matmul kernel.
    h2d = linear_residual_pallas(attn.reshape(B * S, D),
                                 p["out_w"], p["out_b"], h2d)

    # Fused LN -> fc1 -> gelu (bf16 intermediate), then fc2 with fused residual.
    mlp = ln_linear_pallas(h2d, p["ln2_g"], p["ln2_b"], p["fc1_w"], p["fc1_b"],
                           activation="gelu", out_dtype=jnp.bfloat16)
    h2d = linear_residual_pallas(mlp, p["fc2_w"], p["fc2_b"], h2d)
    return h2d.reshape(B, S, D)


def spool_forward(params, x, *, num_lookback, num_lookahead, local_frame_range):
    """x: (B, T, C, H, W) video -> (sequence (B, T+2, D), cls_token (B, D))."""
    B, T, C, Hi, Wi = x.shape
    P = params["patch"]
    num_heads = params["num_heads"]
    assert num_lookback + num_lookahead == num_heads
    nph, npw = Hi // P, Wi // P
    num_patches = nph * npw

    # --- BackboneFrameEncoder: patch-embed + mean-pool + LN in one kernel.
    patches = x.reshape(B, T, C, nph, P, npw, P)
    patches = patches.transpose(0, 1, 3, 5, 2, 4, 6)
    patches = patches.reshape(B * T * num_patches, C * P * P)
    emb = patch_embed_pool_ln_pallas(patches, params["patch_w"],
                                     params["patch_b"], params["bb_ln_g"],
                                     params["bb_ln_b"],
                                     num_patches=num_patches)
    D = emb.shape[-1]
    emb = emb.reshape(B, T, D)

    # --- AddCLSFrames: learned context frames at both ends
    cls_s = jnp.broadcast_to(params["cls_start"][None, None, :], (B, 1, D))
    cls_e = jnp.broadcast_to(params["cls_end"][None, None, :], (B, 1, D))
    h = jnp.concatenate([cls_s, emb, cls_e], axis=1)              # (B, S, D)

    # --- BTTransformer stack (mask is generated inside the attention kernel)
    for layer in params["layers"]:
        h = bt_transformer_layer(layer, h, num_heads=num_heads,
                                 num_lookback=num_lookback,
                                 local_range=local_frame_range)

    # --- CLSPooling: project concatenated context frames
    pooled_in = jnp.concatenate([h[:, 0, :], h[:, -1, :]], axis=-1)   # (B, 2D)
    cls_token = linear_pallas(pooled_in, params["pool_w"], params["pool_b"],
                              activation="tanh")                      # (B, D)
    return h, cls_token


# --------------------------------------------------------------------------
# Main
# --------------------------------------------------------------------------

if __name__ == "__main__":
    # Small config consistent with Spool's structure.  Note: at this scale all
    # blocks are far below the (8,128) vreg tile, so timings here are launch-
    # overhead bound and not representative of the production D~1024 case.
    B, T, C, HI, WI = 2, 8, 3, 16, 16
    PATCH = 8
    EMBED_DIM = 32
    NUM_HEADS = 4
    NUM_LOOKBACK = 2
    NUM_LOOKAHEAD = 2
    NUM_LAYERS = 2
    LOCAL_RANGE = 4
    MLP_RATIO = 4

    key = jax.random.PRNGKey(0)
    kx, kp = jax.random.split(key)
    x = jax.random.normal(kx, (B, T, C, HI, WI), jnp.float32)

    params = init_params(kp, channels=C, patch=PATCH, embed_dim=EMBED_DIM,
                         num_heads=NUM_HEADS, num_layers=NUM_LAYERS,
                         mlp_ratio=MLP_RATIO)

    seq, cls_token = spool_forward(
        params, x,
        num_lookback=NUM_LOOKBACK,
        num_lookahead=NUM_LOOKAHEAD,
        local_frame_range=LOCAL_RANGE,
    )
    jax.block_until_ready((seq, cls_token))

    assert seq.shape == (B, T + 2, EMBED_DIM), seq.shape
    assert cls_token.shape == (B, EMBED_DIM), cls_token.shape
    assert jnp.all(jnp.isfinite(seq)) and jnp.all(jnp.isfinite(cls_token))
    print("KERNEL_OK")
</pallas_src>

<mosaic_0001>
module attributes {stable_mosaic.version = 11 : i64} {
  func.func @_patch_pool_ln_kernel(%arg0: i32, %arg1: memref<64x192xf32, #tpu.memory_space<vmem>>, %arg2: memref<192x32xbf16, #tpu.memory_space<vmem>>, %arg3: memref<1x32xf32, #tpu.memory_space<vmem>>, %arg4: memref<1x32xf32, #tpu.memory_space<vmem>>, %arg5: memref<1x32xf32, #tpu.memory_space<vmem>>, %arg6: memref<16x32xf32, #tpu.memory_space<vmem>>) attributes {dimension_semantics = [#tpu.dimension_semantics<parallel>], iteration_bounds = array<i64: 1>, scalar_prefetch = 0 : i64, scratch_operands = 0 : i64, tpu.core_type = #tpu.core_type<tc>, window_params = [{transform_indices = @transform_0, window_bounds = array<i64: 64, 192>}, {pipeline_mode = #tpu.pipeline_mode<synchronous>, transform_indices = @transform_1, window_bounds = array<i64: 192, 32>}, {pipeline_mode = #tpu.pipeline_mode<synchronous>, transform_indices = @transform_2, window_bounds = array<i64: 1, 32>}, {pipeline_mode = #tpu.pipeline_mode<synchronous>, transform_indices = @transform_3, window_bounds = array<i64: 1, 32>}, {pipeline_mode = #tpu.pipeline_mode<synchronous>, transform_indices = @transform_4, window_bounds = array<i64: 1, 32>}, {transform_indices = @transform_5, window_bounds = array<i64: 16, 32>}]} {
    %c0 = arith.constant 0 : index
    %c0_0 = arith.constant 0 : index
    %0 = vector.load %arg1[%c0, %c0_0] : memref<64x192xf32, #tpu.memory_space<vmem>>, vector<64x192xf32>
    %1 = arith.truncf %0 : vector<64x192xf32> to vector<64x192xbf16>
    %c0_1 = arith.constant 0 : index
    %c0_2 = arith.constant 0 : index
    %2 = vector.load %arg2[%c0_1, %c0_2] : memref<192x32xbf16, #tpu.memory_space<vmem>>, vector<192x32xbf16>
    %cst = arith.constant dense<0.000000e+00> : vector<64x32xf32>
    %3 = tpu.matmul %1, %2, %cst {dimension_numbers = #tpu.dot_dimension_numbers<[1], [0], [0], [1], [0, 0, 1, 1], [], []>} : vector<64x192xbf16>, vector<192x32xbf16>, vector<64x32xf32> -> vector<64x32xf32>
    %c0_3 = arith.constant 0 : index
    %c0_4 = arith.constant 0 : index
    %4 = vector.load %arg3[%c0_3, %c0_4] : memref<1x32xf32, #tpu.memory_space<vmem>>, vector<1x32xf32>
    %5 = vector.broadcast %4 : vector<1x32xf32> to vector<64x32xf32>
    %6 = arith.addf %3, %5 : vector<64x32xf32>
    %7 = vector.shape_cast %6 : vector<64x32xf32> to vector<16x4x32xf32>
    %cst_5 = arith.constant dense<0.000000e+00> : vector<16x32xf32>
    %8 = vector.multi_reduction <add>, %7, %cst_5 [1] : vector<16x4x32xf32> to vector<16x32xf32>
    %cst_6 = arith.constant 4.000000e+00 : f32
    %9 = vector.broadcast %cst_6 : f32 to vector<16x32xf32>
    %10 = arith.divf %8, %9 : vector<16x32xf32>
    %c0_7 = arith.constant 0 : index
    %c0_8 = arith.constant 0 : index
    %11 = vector.load %arg4[%c0_7, %c0_8] : memref<1x32xf32, #tpu.memory_space<vmem>>, vector<1x32xf32>
    %c0_9 = arith.constant 0 : index
    %c0_10 = arith.constant 0 : index
    %12 = vector.load %arg5[%c0_9, %c0_10] : memref<1x32xf32, #tpu.memory_space<vmem>>, vector<1x32xf32>
    %cst_11 = arith.constant dense<0.000000e+00> : vector<16xf32>
    %13 = vector.multi_reduction <add>, %10, %cst_11 [1] : vector<16x32xf32> to vector<16xf32>
    %14 = vector.shape_cast %13 : vector<16xf32> to vector<16x1xf32>
    %cst_12 = arith.constant 3.200000e+01 : f32
    %15 = vector.broadcast %cst_12 : f32 to vector<16x1xf32>
    %16 = arith.divf %14, %15 : vector<16x1xf32>
    %17 = vector.broadcast %16 : vector<16x1xf32> to vector<16x32xf32>
    %18 = arith.subf %10, %17 : vector<16x32xf32>
    %19 = arith.mulf %18, %18 : vector<16x32xf32>
    %cst_13 = arith.constant dense<0.000000e+00> : vector<16xf32>
    %20 = vector.multi_reduction <add>, %19, %cst_13 [1] : vector<16x32xf32> to vector<16xf32>
    %21 = vector.shape_cast %20 : vector<16xf32> to vector<16x1xf32>
    %cst_14 = arith.constant 3.200000e+01 : f32
    %22 = vector.broadcast %cst_14 : f32 to vector<16x1xf32>
    %23 = arith.divf %21, %22 : vector<16x1xf32>
    %24 = vector.broadcast %16 : vector<16x1xf32> to vector<16x32xf32>
    %25 = arith.subf %10, %24 : vector<16x32xf32>
    %cst_15 = arith.constant 9.99999974E-6 : f32
    %26 = vector.broadcast %cst_15 : f32 to vector<16x1xf32>
    %27 = arith.addf %23, %26 : vector<16x1xf32>
    %28 = math.rsqrt %27 : vector<16x1xf32>
    %29 = vector.broadcast %28 : vector<16x1xf32> to vector<16x32xf32>
    %30 = arith.mulf %25, %29 : vector<16x32xf32>
    %31 = vector.broadcast %11 : vector<1x32xf32> to vector<16x32xf32>
    %32 = arith.mulf %30, %31 : vector<16x32xf32>
    %33 = vector.broadcast %12 : vector<1x32xf32> to vector<16x32xf32>
    %34 = arith.addf %32, %33 : vector<16x32xf32>
    %c0_16 = arith.constant 0 : index
    %c0_17 = arith.constant 0 : index
    %35 = vector.load %arg6[%c0_16, %c0_17] : memref<16x32xf32, #tpu.memory_space<vmem>>, vector<16x32xf32>
    tpu.vector_store %arg6[%c0_16, %c0_17], %34 {strides = array<i32>} : memref<16x32xf32, #tpu.memory_space<vmem>>, vector<16x32xf32>,
    return
  }
  func.func @transform_0(%arg0: i32) -> (i32, i32) {
    %c0_i32 = arith.constant 0 : i32
    %c0_i32_0 = arith.constant 0 : i32
    return %arg0, %c0_i32 : i32, i32
  }
  func.func @transform_1(%arg0: i32) -> (i32, i32) {
    %c0_i32 = arith.constant 0 : i32
    %c0_i32_0 = arith.constant 0 : i32
    %c0_i32_1 = arith.constant 0 : i32
    return %c0_i32, %c0_i32_0 : i32, i32
  }
  func.func @transform_2(%arg0: i32) -> (i32, i32) {
    %c0_i32 = arith.constant 0 : i32
    %c0_i32_0 = arith.constant 0 : i32
    %c0_i32_1 = arith.constant 0 : i32
    return %c0_i32, %c0_i32_0 : i32, i32
  }
  func.func @transform_3(%arg0: i32) -> (i32, i32) {
    %c0_i32 = arith.constant 0 : i32
    %c0_i32_0 = arith.constant 0 : i32
    %c0_i32_1 = arith.constant 0 : i32
    return %c0_i32, %c0_i32_0 : i32, i32
  }
  func.func @transform_4(%arg0: i32) -> (i32, i32) {
    %c0_i32 = arith.constant 0 : i32
    %c0_i32_0 = arith.constant 0 : i32
    %c0_i32_1 = arith.constant 0 : i32
    return %c0_i32, %c0_i32_0 : i32, i32
  }
  func.func @transform_5(%arg0: i32) -> (i32, i32) {
    %c0_i32 = arith.constant 0 : i32
    %c0_i32_0 = arith.constant 0 : i32
    return %arg0, %c0_i32 : i32, i32
  }
}

</mosaic_0001>

<bundles_post_ra>
// kernel: tpu_custom_call.1
= control target key start
LH: loop header
LB: loop body
LE: loop exit
PB: predicated region body
PF: predicated region fallthrough
CT: control target
= control target key end

     0   :  { %v797_v1 = vmov 0   ;;  %vm149_vm0 = vcmask 523264   ;;  %s1161_s0 = inlined_call_operand.vmem [shape: f32[64,192], index: 0, kind: input, shape index: {}]   ;;  %s1162_s1 = inlined_call_operand.vmem [shape: bf16[192,32], index: 1, kind: input, shape index: {}]   ;;  %s1163_s2 = inlined_call_operand.vmem [shape: f32[1,32], index: 2, kind: input, shape index: {}]   ;;  %s1164_s3 = inlined_call_operand.vmem [shape: f32[1,32], index: 3, kind: input, shape index: {}]   ;;  %s1165_s4 = inlined_call_operand.vmem [shape: f32[1,32], index: 4, kind: input, shape index: {}]   ;;  %s1166_s5 = inlined_call_operand.hbm [shape: f32[16,32], index: 5, kind: output, shape index: {}]  }
   0x1   :  { %v757_v0 = vld [vmem:[%s1162_s1] sm:$0xff]   ;;  %162 = vmatprep.subr.bf16.mxu0 %v797_v1  ;;  %729 = vmatprep.subr.bf16.mxu1 %v797_v1  ;;  %v758_v2 = vld [vmem:[%s1162_s1 + $0x8] sm:$0xff]   ;;  %v759_v3 = vld [vmem:[%s1162_s1 + $0x10] sm:$0xff]  }
   0x2   :  { %163 = vmatpush1.bf16.msra.mxu0 %v757_v0  ;;  %741 = vmatpush1.bf16.msra.mxu1 %v757_v0  ;;  %v760_v4 = vld [vmem:[%s1162_s1 + $0x18] sm:$0xff]   ;;  %v23_v5 = vld [vmem:[%s1161_s0 + $0x8] sm:$0xff]  ;;  %v761_v10 = vld [vmem:[%s1162_s1 + $0x20] sm:$0xff]  }
   0x3   :  { %164 = vmatprep.subr.bf16.mxu0 %v797_v1  ;;  %730 = vmatprep.subr.bf16.mxu1 %v797_v1  ;;  %v25_v6 = vld [vmem:[%s1161_s0 + $0x18] sm:$0xff]  ;;  %v31_v7 = vld [vmem:[%s1161_s0 + $0x48] sm:$0xff] }
   0x4   :  { %v39_v8 = vpack.c.bf16 %v25_v6, %v23_v5  ;;  %v33_v9 = vld [vmem:[%s1161_s0 + $0x58] sm:$0xff] }
   0x5   :  { %v43_v11 = vpack.c.bf16 %v33_v9, %v31_v7 }
   0x6   :  { %165 = vmatpush1.bf16.msra.mxu0 %v758_v2  ;;  %742 = vmatpush1.bf16.msra.mxu1 %v758_v2 }
   0x7   :  { %166 = vmatprep.subr.bf16.mxu0 %v797_v1  ;;  %731 = vmatprep.subr.bf16.mxu1 %v797_v1 }
   0x8   :  { %723 = vmatprep.mubr.msk.bf16.mxu0 %vm149_vm0, %v39_v8  ;;  %725 = vmatprep.mubr.msk.bf16.mxu1 %vm149_vm0, %v43_v11 }
   0xa   :  { %167 = vmatpush1.bf16.msra.mxu0 %v759_v3  ;;  %743 = vmatpush1.bf16.msra.mxu1 %v759_v3 }
   0xb   :  { %168 = vmatprep.subr.bf16.mxu0 %v797_v1  ;;  %732 = vmatprep.subr.bf16.mxu1 %v797_v1 }
   0xe   :  { %169 = vmatpush1.bf16.msra.mxu0 %v760_v4  ;;  %744 = vmatpush1.bf16.msra.mxu1 %v760_v4 }
   0xf   :  { %170 = vmatprep.subr.bf16.mxu0 %v797_v1  ;;  %733 = vmatprep.subr.bf16.mxu1 %v797_v1 }
  0x10   :  { %10 = vsyncpa [#allocation3], 0  ;;  %v762_v12 = vld [vmem:[%s1162_s1 + $0x28] sm:$0xff]   ;;  %v763_v13 = vld [vmem:[%s1162_s1 + $0x30] sm:$0xff]   ;;  %vm251_vm1 = vcmask 257024   ;;  %vm399_vm2 = vcmask 1041409  }
  0x11   :  { %v764_v14 = vld [vmem:[%s1162_s1 + $0x38] sm:$0xff]   ;;  %v765_v15 = vld [vmem:[%s1162_s1 + $0x40] sm:$0xff]   ;;  %v766_v16 = vld [vmem:[%s1162_s1 + $0x48] sm:$0xff]   ;;  %vm401_vm3 = vcmask 1042434   ;;  %vm403_vm4 = vcmask 1043459   ;;  %vm405_vm5 = vcmask 1044484  }
  0x12   :  { %171 = vmatpush1.bf16.msra.mxu0 %v761_v10  ;;  %745 = vmatpush1.bf16.msra.mxu1 %v761_v10  ;;  %v767_v17 = vld [vmem:[%s1162_s1 + $0x50] sm:$0xff]   ;;  %v768_v18 = vld [vmem:[%s1162_s1 + $0x58] sm:$0xff]   ;;  %v22_v19 = vld [vmem:[%s1161_s0] sm:$0xff]  ;;  %vm407_vm6 = vcmask 1045509   ;;  %vm409_vm7 = vcmask 1046534   ;;  %vm411_vm8 = vcmask 1047559  }
  0x13   :  { %172 = vmatprep.subr.bf16.mxu0 %v797_v1  ;;  %734 = vmatprep.subr.bf16.mxu1 %v797_v1  ;;  %v24_v20 = vld [vmem:[%s1161_s0 + $0x10] sm:$0xff]  ;;  %v30_v21 = vld [vmem:[%s1161_s0 + $0x40] sm:$0xff]  ;;  %v27_v23 = vld [vmem:[%s1161_s0 + $0x28] sm:$0xff]  ;;  %vm422_vm9 = vcmask 261120  }
  0x14   :  { %v32_v22 = vld [vmem:[%s1161_s0 + $0x50] sm:$0xff]  ;;  %v29_v24 = vld [vmem:[%s1161_s0 + $0x38] sm:$0xff]  ;;  %v35_v25 = vld [vmem:[%s1161_s0 + $0x68] sm:$0xff]  ;;  %v38_v27 = vpack.c.bf16 %v24_v20, %v22_v19 }
  0x15   :  { %v37_v26 = vld [vmem:[%s1161_s0 + $0x78] sm:$0xff]  ;;  %v42_v28 = vpack.c.bf16 %v32_v22, %v30_v21  ;;  %v41_v29 = vpack.c.bf16 %v29_v24, %v27_v23  ;;  %v26_v31 = vld [vmem:[%s1161_s0 + $0x20] sm:$0xff]  ;;  %v28_v32 = vld [vmem:[%s1161_s0 + $0x30] sm:$0xff] }
  0x16   :  { %173 = vmatpush1.bf16.msra.mxu0 %v762_v12  ;;  %746 = vmatpush1.bf16.msra.mxu1 %v762_v12  ;;  %v45_v30 = vpack.c.bf16 %v37_v26, %v35_v25  ;;  %v34_v33 = vld [vmem:[%s1161_s0 + $0x60] sm:$0xff]  ;;  %v36_v34 = vld [vmem:[%s1161_s0 + $0x70] sm:$0xff]  ;;  %v40_v35 = vpack.c.bf16 %v28_v32, %v26_v31 }
  0x17   :  { %174 = vmatprep.subr.bf16.mxu0 %v797_v1  ;;  %735 = vmatprep.subr.bf16.mxu1 %v797_v1  ;;  %v44_v36 = vpack.c.bf16 %v36_v34, %v34_v33  ;;  %v946_v37 = vld [vmem:[%s1163_s2] ss:$0 sm:$0xff] }
  0x1a   :  { %175 = vmatpush1.bf16.msra.mxu0 %v763_v13  ;;  %747 = vmatpush1.bf16.msra.mxu1 %v763_v13 }
  0x1b   :  { %176 = vmatprep.subr.bf16.mxu0 %v797_v1  ;;  %736 = vmatprep.subr.bf16.mxu1 %v797_v1 }
  0x1e   :  { %177 = vmatpush1.bf16.msra.mxu0 %v764_v14  ;;  %748 = vmatpush1.bf16.msra.mxu1 %v764_v14 }
  0x1f   :  { %178 = vmatprep.subr.bf16.mxu0 %v797_v1  ;;  %737 = vmatprep.subr.bf16.mxu1 %v797_v1 }
  0x22   :  { %179 = vmatpush1.bf16.msra.mxu0 %v765_v15  ;;  %749 = vmatpush1.bf16.msra.mxu1 %v765_v15 }
  0x23   :  { %180 = vmatprep.subr.bf16.mxu0 %v797_v1  ;;  %738 = vmatprep.subr.bf16.mxu1 %v797_v1 }
  0x26   :  { %181 = vmatpush1.bf16.msra.mxu0 %v766_v16  ;;  %750 = vmatpush1.bf16.msra.mxu1 %v766_v16 }
  0x27   :  { %182 = vmatprep.subr.bf16.mxu0 %v797_v1  ;;  %739 = vmatprep.subr.bf16.mxu1 %v797_v1 }
  0x2a   :  { %183 = vmatpush1.bf16.msra.mxu0 %v767_v17  ;;  %751 = vmatpush1.bf16.msra.mxu1 %v767_v17 }
  0x2b   :  { %184 = vmatprep.subr.bf16.mxu0 %v797_v1  ;;  %740 = vmatprep.subr.bf16.mxu1 %v797_v1 }
  0x2e   :  { %185 = vmatpush1.bf16.msra.mxu0 %v768_v18  ;;  %752 = vmatpush1.bf16.msra.mxu1 %v768_v18 }
  0x31   :  { %195 = vmatmul.mubr.bf16.vlgmr.msra.gmra.mrb[0].mxu0 %v38_v27  ;;  %211 = vmatmul.mubr.bf16.vlgmr.msra.gmra.mrb[0].mxu1 %v42_v28 }
  0x32   :  { %724 = vmatprep.mubr.msk.bf16.mxu0 %vm149_vm0, %v41_v29  ;;  %726 = vmatprep.mubr.msk.bf16.mxu1 %vm149_vm0, %v45_v30 }
  0x39   :  { %203 = vmatmul.mubr.bf16.gmra.mrb[4].mxu0 %v40_v35  ;;  %219 = vmatmul.mubr.bf16.gmra.mrb[4].mxu1 %v44_v36 }
 0x104   :  { %v196_v38 = vpop.f32.mrb[0].mxu0  ;;  %v212_v39 = vpop.f32.mrb[0].mxu1 }
 0x105   :  { %v197_v40 = vadd.f32 %v946_v37, %v196_v38  ;;  %v213_v41 = vadd.f32 %v946_v37, %v212_v39  ;;  %v198_v42 = vpop.f32.mrb[1].mxu0  ;;  %v214_v43 = vpop.f32.mrb[1].mxu1 }
 0x106   :  { %v199_v44 = vpop.f32.mrb[2].mxu0  ;;  %v215_v45 = vpop.f32.mrb[2].mxu1 }
 0x107   :  { %v235_v46 = vcombine.high %v197_v40, %v197_v40  ;;  %v252_v47 = vsel %vm251_vm1, %v197_v40, 0.0  ;;  %v239_v48 = vcombine.high %v213_v41, %v213_v41  ;;  %v308_v49 = vsel %vm251_vm1, %v213_v41, 0.0  ;;  %v201_v50 = vpop.f32.mrb[3].mxu0  ;;  %v217_v51 = vpop.f32.mrb[3].mxu1 }
 0x108   :  { %v253_v52 = vrot.slane %v252_v47, 4  ;;  %v309_v53 = vrot.slane %v308_v49, 4  ;;  %v200_v54 = vadd.f32 %v946_v37, %v199_v44  ;;  %v216_v55 = vadd.f32 %v946_v37, %v215_v45 }
 0x109   :  { %v259_v56 = vsel %vm251_vm1, %v235_v46, 0.0  ;;  %v315_v57 = vsel %vm251_vm1, %v239_v48, 0.0 }
 0x10a   :  { %v254_v58 = vadd.f32 %v253_v52, %v252_v47  ;;  %v260_v59 = vrot.slane %v259_v56, 4  ;;  %v310_v60 = vadd.f32 %v309_v53, %v308_v49  ;;  %v316_v61 = vrot.slane %v315_v57, 4 }
 0x10b   :  { %v236_v62 = vcombine.high %v200_v54, %v200_v54  ;;  %v266_v63 = vsel %vm251_vm1, %v200_v54, 0.0  ;;  %v240_v0 = vcombine.high %v216_v55, %v216_v55  ;;  %v322_v1 = vsel %vm251_vm1, %v216_v55, 0.0 }
 0x10c   :  { %v255_v2 = vrot.slane %v254_v58, 2  ;;  %v261_v3 = vadd.f32 %v260_v59, %v259_v56  ;;  %v311_v4 = vrot.slane %v310_v60, 2  ;;  %v317_v5 = vadd.f32 %v316_v61, %v315_v57  ;;  %v204_v6 = vpop.f32.mrb[4].mxu0  ;;  %v220_v7 = vpop.f32.mrb[4].mxu1 }
 0x10d   :  { %v267_v8 = vrot.slane %v266_v63, 4  ;;  %v273_v9 = vsel %vm251_vm1, %v236_v62, 0.0  ;;  %v323_v10 = vrot.slane %v322_v1, 4  ;;  %v329_v11 = vsel %vm251_vm1, %v240_v0, 0.0  ;;  %v206_v12 = vpop.f32.mrb[5].mxu0  ;;  %v222_v13 = vpop.f32.mrb[5].mxu1 }
 0x10e   :  { %v256_v14 = vadd.f32 %v255_v2, %v254_v58  ;;  %v262_v15 = vrot.slane %v261_v3, 2  ;;  %v312_v16 = vadd.f32 %v311_v4, %v310_v60  ;;  %v318_v17 = vrot.slane %v317_v5, 2  ;;  %v207_v18 = vpop.f32.mrb[6].mxu0  ;;  %v223_v19 = vpop.f32.mrb[6].mxu1 }
 0x10f   :  { %v268_v20 = vadd.f32 %v267_v8, %v266_v63  ;;  %v274_v21 = vrot.slane %v273_v9, 4  ;;  %v324_v22 = vadd.f32 %v323_v10, %v322_v1  ;;  %v330_v23 = vrot.slane %v329_v11, 4  ;;  %v209_v24 = vpop.f32.mrb[7].mxu0  ;;  %v225_v25 = vpop.f32.mrb[7].mxu1 }
 0x110   :  { %v257_v26 = vrot.slane %v256_v14, 1  ;;  %v263_v27 = vadd.f32 %v262_v15, %v261_v3  ;;  %v313_v28 = vrot.slane %v312_v16, 1  ;;  %v319_v29 = vadd.f32 %v318_v17, %v317_v5 }
 0x111   :  { %v269_v30 = vrot.slane %v268_v20, 2  ;;  %v275_v31 = vadd.f32 %v274_v21, %v273_v9  ;;  %v325_v32 = vrot.slane %v324_v22, 2  ;;  %v331_v33 = vadd.f32 %v330_v23, %v329_v11 }
 0x112   :  { %v258_v34 = vadd.f32 %v257_v26, %v256_v14  ;;  %v264_v35 = vrot.slane %v263_v27, 1  ;;  %v314_v36 = vadd.f32 %v313_v28, %v312_v16  ;;  %v320_v38 = vrot.slane %v319_v29, 1 }
 0x113   :  { %v270_v39 = vadd.f32 %v269_v30, %v268_v20  ;;  %v276_v40 = vrot.slane %v275_v31, 2  ;;  %v326_v41 = vadd.f32 %v325_v32, %v324_v22  ;;  %v332_v42 = vrot.slane %v331_v33, 2 }
 0x114   :  { %v265_v43 = vadd.f32 %v264_v35, %v263_v27  ;;  %v960_v44 = vmul.f32 0.25, %v258_v34  ;;  %v321_v45 = vadd.f32 %v320_v38, %v319_v29  ;;  %v962_v46 = vmul.f32 0.25, %v314_v36 }
 0x115   :  { %v271_v47 = vrot.slane %v270_v39, 1  ;;  %v277_v48 = vadd.f32 %v276_v40, %v275_v31  ;;  %v327_v49 = vrot.slane %v326_v41, 1  ;;  %v333_v50 = vadd.f32 %v332_v42, %v331_v33 }
 0x116   :  { %v964_v51 = vmul.f32 0.25, %v265_v43  ;;  %v966_v52 = vmul.f32 0.25, %v321_v45  ;;  %v205_v53 = vadd.f32 %v946_v37, %v204_v6  ;;  %v221_v54 = vadd.f32 %v946_v37, %v220_v7 }
 0x117   :  { %v272_v55 = vadd.f32 %v271_v47, %v270_v39  ;;  %v278_v56 = vrot.slane %v277_v48, 1  ;;  %v328_v57 = vadd.f32 %v327_v49, %v326_v41  ;;  %v334_v58 = vrot.slane %v333_v50, 1 }
 0x118   :  { %v400_v59 = vsel %vm399_vm2, %v964_v51, %v960_v44  ;;  %v413_v60 = vsel %vm399_vm2, %v966_v52, %v962_v46  ;;  %v237_v61 = vcombine.high %v205_v53, %v205_v53  ;;  %v280_v62 = vsel %vm251_vm1, %v205_v53, 0.0 }
 0x119   :  { %v279_v63 = vadd.f32 %v278_v56, %v277_v48  ;;  %v977_v0 = vmul.f32 0.25, %v272_v55  ;;  %v335_v1 = vadd.f32 %v334_v58, %v333_v50  ;;  %v979_v2 = vmul.f32 0.25, %v328_v57 }
 0x11a   :  { %v281_v3 = vrot.slane %v280_v62, 4  ;;  %v287_v4 = vsel %vm251_vm1, %v237_v61, 0.0  ;;  %v241_v5 = vcombine.high %v221_v54, %v221_v54  ;;  %v336_v6 = vsel %vm251_vm1, %v221_v54, 0.0 }
 0x11b   :  { %v983_v7 = vmul.f32 0.25, %v279_v63  ;;  %v985_v8 = vmul.f32 0.25, %v335_v1  ;;  %v989_v9 = vsel %vm401_vm3, %v979_v2, %v413_v60  ;;  %v288_v10 = vrot.slane %v287_v4, 4 }
 0x11c   :  { %v282_v11 = vadd.f32 %v281_v3, %v280_v62  ;;  %v337_v12 = vrot.slane %v336_v6, 4  ;;  %v343_v13 = vsel %vm251_vm1, %v241_v5, 0.0  ;;  %v208_v14 = vadd.f32 %v946_v37, %v207_v18 }
 0x11d   :  { %v289_v15 = vadd.f32 %v288_v10, %v287_v4  ;;  %v344_v16 = vrot.slane %v343_v13, 4  ;;  %v224_v17 = vadd.f32 %v946_v37, %v223_v19  ;;  %v402_v20 = vsel %vm401_vm3, %v977_v0, %v400_v59 }
 0x11e   :  { %v283_v21 = vrot.slane %v282_v11, 2  ;;  %v338_v22 = vadd.f32 %v337_v12, %v336_v6  ;;  %v238_v23 = vcombine.high %v208_v14, %v208_v14  ;;  %v294_v24 = vsel %vm251_vm1, %v208_v14, 0.0 }
 0x11f   :  { %v290_v25 = vrot.slane %v289_v15, 2  ;;  %v345_v26 = vadd.f32 %v344_v16, %v343_v13  ;;  %v295_v27 = vrot.slane %v294_v24, 4  ;;  %v242_v28 = vcombine.high %v224_v17, %v224_v17 }
 0x120   :  { %v284_v18 = vadd.f32 %v283_v21, %v282_v11  ;;  %v339_v29 = vrot.slane %v338_v22, 2  ;;  %v301_v30 = vsel %vm251_vm1, %v238_v23, 0.0  ;;  %v350_v37 = vsel %vm251_vm1, %v224_v17, 0.0 }
 0x121   :  { %v291_v19 = vadd.f32 %v290_v25, %v289_v15  ;;  %v346_v31 = vrot.slane %v345_v26, 2  ;;  %v296_v32 = vadd.f32 %v295_v27, %v294_v24  ;;  %v302_v33 = vrot.slane %v301_v30, 4 }
 0x122   :  { %v285_v34 = vrot.slane %v284_v18, 1  ;;  %v340_v35 = vadd.f32 %v339_v29, %v338_v22  ;;  %v351_v36 = vrot.slane %v350_v37, 4  ;;  %v357_v38 = vsel %vm251_vm1, %v242_v28, 0.0 }
 0x123   :  { %v292_v39 = vrot.slane %v291_v19, 1  ;;  %v347_v40 = vadd.f32 %v346_v31, %v345_v26  ;;  %v297_v41 = vrot.slane %v296_v32, 2  ;;  %v303_v42 = vadd.f32 %v302_v33, %v301_v30 }
 0x124   :  { %v286_v43 = vadd.f32 %v285_v34, %v284_v18  ;;  %v341_v45 = vrot.slane %v340_v35, 1  ;;  %v352_v47 = vadd.f32 %v351_v36, %v350_v37  ;;  %v358_v48 = vrot.slane %v357_v38, 4 }
 0x125   :  { %v293_v49 = vadd.f32 %v292_v39, %v291_v19  ;;  %v348_v50 = vrot.slane %v347_v40, 1  ;;  %v298_v53 = vadd.f32 %v297_v41, %v296_v32  ;;  %v304_v54 = vrot.slane %v303_v42, 2 }
 0x126   :  { %v369_v55 = vmul.f32 0.25, %v286_v43  ;;  %v342_v56 = vadd.f32 %v341_v45, %v340_v35  ;;  %v353_v57 = vrot.slane %v352_v47, 2  ;;  %v359_v58 = vadd.f32 %v358_v48, %v357_v38 }
 0x127   :  { %v349_v59 = vadd.f32 %v348_v50, %v347_v40  ;;  %v299_v60 = vrot.slane %v298_v53, 1  ;;  %v305_v61 = vadd.f32 %v304_v54, %v303_v42  ;;  %v370_v62 = vmul.f32 0.25, %v293_v49 }
 0x128   :  { %v1000_v63 = vmul.f32 0.25, %v342_v56  ;;  %v354_v1 = vadd.f32 %v353_v57, %v352_v47  ;;  %v360_v3 = vrot.slane %v359_v58, 2  ;;  %v404_v4 = vsel %vm403_vm4, %v983_v7, %v402_v20 }
 0x129   :  { %v1004_v5 = vmul.f32 0.25, %v349_v59  ;;  %v300_v6 = vadd.f32 %v299_v60, %v298_v53  ;;  %v306_v10 = vrot.slane %v305_v61, 1  ;;  %v406_v11 = vsel %vm405_vm5, %v369_v55, %v404_v4 }
 0x12a   :  { %v355_v12 = vrot.slane %v354_v1, 1  ;;  %v361_v13 = vadd.f32 %v360_v3, %v359_v58  ;;  %v408_v14 = vsel %vm407_vm6, %v370_v62, %v406_v11  ;;  %v415_v15 = vsel %vm403_vm4, %v985_v8, %v989_v9 }
 0x12b   :  { %v307_v16 = vadd.f32 %v306_v10, %v305_v61  ;;  %v371_v17 = vmul.f32 0.25, %v300_v6  ;;  %v416_v21 = vsel %vm405_vm5, %v1000_v63, %v415_v15 }
 0x12c   :  { %v356_v20 = vadd.f32 %v355_v12, %v354_v1  ;;  %v362_v22 = vrot.slane %v361_v13, 1  ;;  %v417_v25 = vsel %vm407_vm6, %v1004_v5, %v416_v21 }
 0x12d   :  { %v372_v23 = vmul.f32 0.25, %v307_v16  ;;  %v410_v24 = vsel %vm409_vm7, %v371_v17, %v408_v14 }
 0x12e   :  { %v379_v26 = vmul.f32 0.25, %v356_v20  ;;  %v363_v27 = vadd.f32 %v362_v22, %v361_v13 }
 0x12f   :  { %v412_v28 = vsel %vm411_vm8, %v372_v23, %v410_v24 }
 0x130   :  { %v423_v9 = vsel %vm422_vm9, %v412_v28, 0.0  ;;  %v380_v18 = vmul.f32 0.25, %v363_v27  ;;  %v418_v29 = vsel %vm409_vm7, %v379_v26, %v417_v25 }
 0x131   :  { %424 = vadd.xlane.f32.xlu0 %v423_v9 }
 0x132   :  { %v419_v30 = vsel %vm411_vm8, %v380_v18, %v418_v29 }
 0x133   :  { %v426_v37 = vsel %vm422_vm9, %v419_v30, 0.0 }
 0x135   :  { %427 = vadd.xlane.f32.xlu0 %v426_v37 }
 0x1be   :  { %v425_v19 = vpop.xlane.xlu0 %424 }
 0x1bf   :  { %v430_v31 = vmul.f32 0.03125, %v425_v19 }
 0x1c1   :  { %v434_v32 = vrot.slane %v430_v31, 1  ;;  %v435_v33 = vrot.slane %v430_v31, 2  ;;  %v436_v34 = vrot.slane %v430_v31, 3  ;;  %v437_v35 = vrot.slane %v430_v31, 4 }
 0x1c2   :  { %v428_v36 = vpop.xlane.xlu0 %427  ;;  %v438_v38 = vrot.slane %v430_v31, 5  ;;  %v439_v39 = vrot.slane %v430_v31, 6  ;;  %v440_v40 = vrot.slane %v430_v31, 7  ;;  %v1022_v41 = vsub.f32 %v960_v44, %v430_v31 }
 0x1c3   :  { %v431_v42 = vmul.f32 0.03125, %v428_v36  ;;  %v1025_v43 = vsub.f32 %v964_v51, %v434_v32  ;;  %v1028_v45 = vsub.f32 %v977_v0, %v435_v33  ;;  %v1031_v47 = vsub.f32 %v983_v7, %v436_v34 }
 0x1c4   :  { %v1033_v48 = vsub.f32 %v369_v55, %v437_v35  ;;  %v1035_v49 = vsub.f32 %v370_v62, %v438_v38  ;;  %v1037_v50 = vsub.f32 %v371_v17, %v439_v39  ;;  %v1039_v53 = vsub.f32 %v372_v23, %v440_v40 }
 0x1c5   :  { %v481_v44 = vmul.f32 %v1025_v43, %v1025_v43  ;;  %v482_v51 = vmul.f32 %v1028_v45, %v1028_v45  ;;  %v483_v0 = vmul.f32 %v1031_v47, %v1031_v47  ;;  %v480_v7 = vmul.f32 %v1022_v41, %v1022_v41 }
 0x1c6   :  { %v484_v54 = vmul.f32 %v1033_v48, %v1033_v48  ;;  %v485_v55 = vmul.f32 %v1035_v49, %v1035_v49  ;;  %v486_v56 = vmul.f32 %v1037_v50, %v1037_v50  ;;  %v487_v57 = vmul.f32 %v1039_v53, %v1039_v53 }
 0x1c7   :  { %v512_v58 = vrot.slane %v481_v44, 7  ;;  %v514_v59 = vrot.slane %v482_v51, 6  ;;  %v441_v60 = vrot.slane %v431_v42, 1  ;;  %v516_v61 = vrot.slane %v483_v0, 5 }
 0x1c8   :  { %v518_v62 = vrot.slane %v484_v54, 4  ;;  %v520_v1 = vrot.slane %v485_v55, 3  ;;  %v522_v3 = vrot.slane %v486_v56, 2  ;;  %v442_v6 = vrot.slane %v431_v42, 2 }
 0x1c9   :  { %v513_v4 = vsel %vm399_vm2, %v512_v58, %v480_v7  ;;  %v443_v10 = vrot.slane %v431_v42, 3  ;;  %v444_v11 = vrot.slane %v431_v42, 4  ;;  %v445_v13 = vrot.slane %v431_v42, 5 }
 0x1ca   :  { %v515_v12 = vsel %vm401_vm3, %v514_v59, %v513_v4  ;;  %v446_v14 = vrot.slane %v431_v42, 6  ;;  %v447_v15 = vrot.slane %v431_v42, 7  ;;  %v1061_v17 = vsub.f32 %v962_v46, %v431_v42 }
 0x1cb   :  { %v517_v16 = vsel %vm403_vm4, %v516_v61, %v515_v12  ;;  %v1064_v21 = vsub.f32 %v966_v52, %v441_v60  ;;  %v1067_v20 = vsub.f32 %v979_v2, %v442_v6  ;;  %v1071_v23 = vsub.f32 %v985_v8, %v443_v10 }
 0x1cc   :  { %v519_v22 = vsel %vm405_vm5, %v518_v62, %v517_v16  ;;  %v1074_v24 = vsub.f32 %v1000_v63, %v444_v11  ;;  %v1077_v25 = vsub.f32 %v1004_v5, %v445_v13  ;;  %v524_v27 = vrot.slane %v487_v57, 1  ;;  %v727_v62 = vld [vmem:[%s1164_s3] ss:$0 sm:$0xff] }
 0x1cd   :  { %v521_v46 = vsel %vm407_vm6, %v520_v1, %v519_v22  ;;  %v1080_v28 = vsub.f32 %v379_v26, %v446_v14  ;;  %v1082_v52 = vsub.f32 %v380_v18, %v447_v15  ;;  %v489_v9 = vmul.f32 %v1064_v21, %v1064_v21 }
 0x1ce   :  { %v523_v2 = vsel %vm409_vm7, %v522_v3, %v521_v46  ;;  %v490_v8 = vmul.f32 %v1067_v20, %v1067_v20  ;;  %v491_v63 = vmul.f32 %v1071_v23, %v1071_v23  ;;  %v488_v29 = vmul.f32 %v1061_v17, %v1061_v17 }
 0x1cf   :  { %v525_v5 = vsel %vm411_vm8, %v524_v27, %v523_v2  ;;  %v492_v26 = vmul.f32 %v1074_v24, %v1074_v24  ;;  %v493_v30 = vmul.f32 %v1077_v25, %v1077_v25  ;;  %v526_v37 = vrot.slane %v489_v9, 7 }
 0x1d0   :  { %v542_v18 = vsel %vm422_vm9, %v525_v5, 0.0  ;;  %v528_v19 = vrot.slane %v490_v8, 6  ;;  %v494_v31 = vmul.f32 %v1080_v28, %v1080_v28  ;;  %v495_v32 = vmul.f32 %v1082_v52, %v1082_v52  ;;  %v728_v8 = vld [vmem:[%s1165_s4] ss:$0 sm:$0xff]  ;;  %s798_s4 = smov [#allocation2]  }
 0x1d1   :  { %543 = vadd.xlane.f32.xlu1 %v542_v18  ;;  %v527_v33 = vsel %vm399_vm2, %v526_v37, %v488_v29  ;;  %v530_v34 = vrot.slane %v491_v63, 5  ;;  %v532_v36 = vrot.slane %v492_v26, 4  ;;  %v534_v39 = vrot.slane %v493_v30, 3  ;;  %s699_s26 = sshll.u32 %s798_s4, 4  ;;  %s700_s26 = int_to_ptr.vmem [resolvable:$true] %s699_s26 }
 0x1d2   :  { %v529_v35 = vsel %vm401_vm3, %v528_v19, %v527_v33  ;;  %v536_v42 = vrot.slane %v494_v31, 2  ;;  %v538_v51 = vrot.slane %v495_v32, 1  ;;  %s773_s27 = scalar_lea.vmem %s700_s26, 256  ;;  %p778_p1 = scmp.lt.s32.totalorder %s700_s26, %s700_s26 }
 0x1d3   :  { %v531_v38 = vsel %vm403_vm4, %v530_v34, %v529_v35  ;;  %p774_p0 = scmp.ne.s32.totalorder %s700_s26, %s773_s27  ;;  %p779_p2 = scmp.lt.s32.totalorder %s773_s27, %s773_s27 }
 0x1d4   :  { %v533_v40 = vsel %vm405_vm5, %v532_v36, %v531_v38 }
 0x1d5   :  { %v535_v44 = vsel %vm407_vm6, %v534_v39, %v533_v40  ;;  %p780_p3 = por %p779_p2, %p778_p1 }
 0x1d6   :  { %v537_v0 = vsel %vm409_vm7, %v536_v42, %v535_v44 }
 0x1d7   :  { %v539_v7 = vsel %vm411_vm8, %v538_v51, %v537_v0  ;;  %p781_p4 = pnand %p780_p3, %p774_p0 }
 0x1d8   :  { %v545_v54 = vsel %vm422_vm9, %v539_v7, 0.0 }
 0x1d9   :  { %546 = vadd.xlane.f32.xlu1 %v545_v54 }
 0x25e   :  { %v544_v55 = vpop.xlane.xlu1 %543 }
 0x25f   :  { %v548_v56 = vmul.f32 0.03125, %v544_v55 }
 0x261   :  { %v550_v57 = vadd.f32 1e-05, %v548_v56 }
 0x263   :  { %769 = vrsqrt.f32 %v550_v57 }
 0x266   :  { %v547_v58 = vpop.xlane.xlu1 %546 }
 0x267   :  { %v549_v59 = vmul.f32 0.03125, %v547_v58 }
 0x269   :  { %v551_v60 = vadd.f32 1e-05, %v549_v59 }
 0x26b   :  { %771 = vrsqrt.f32 %v551_v60 }
 0x26d   :  { %v770_v61 = vpop.eup %769 }
 0x26e   :  { %v556_v1 = vrot.slane %v770_v61, 1  ;;  %v557_v3 = vrot.slane %v770_v61, 2  ;;  %v558_v4 = vrot.slane %v770_v61, 3  ;;  %v559_v6 = vrot.slane %v770_v61, 4 }
 0x26f   :  { %v560_v10 = vrot.slane %v770_v61, 5  ;;  %v561_v11 = vrot.slane %v770_v61, 6  ;;  %v562_v12 = vrot.slane %v770_v61, 7  ;;  %v586_v13 = vmul.f32 %v770_v61, %v1022_v41 }
 0x270   :  { %v587_v14 = vmul.f32 %v556_v1, %v1025_v43  ;;  %v588_v15 = vmul.f32 %v557_v3, %v1028_v45  ;;  %v589_v16 = vmul.f32 %v558_v4, %v1031_v47  ;;  %v590_v22 = vmul.f32 %v559_v6, %v1033_v48 }
 0x271   :  { %v591_v46 = vmul.f32 %v560_v10, %v1035_v49  ;;  %v592_v27 = vmul.f32 %v561_v11, %v1037_v50  ;;  %v593_v2 = vmul.f32 %v562_v12, %v1039_v53  ;;  %v608_v9 = vmul.f32 %v727_v62, %v586_v13 }
 0x272   :  { %v609_v41 = vmul.f32 %v727_v62, %v587_v14  ;;  %v610_v63 = vmul.f32 %v727_v62, %v588_v15  ;;  %v611_v43 = vmul.f32 %v727_v62, %v589_v16  ;;  %v612_v5 = vmul.f32 %v727_v62, %v590_v22 }
 0x273   :  { %v613_v47 = vmul.f32 %v727_v62, %v591_v46  ;;  %v614_v26 = vmul.f32 %v727_v62, %v592_v27  ;;  %v615_v48 = vmul.f32 %v727_v62, %v593_v2  ;;  %v630_v18 = vadd.f32 %v728_v8, %v608_v9 }
 0x274   :  { %v631_v45 = vadd.f32 %v728_v8, %v609_v41  ;;  %v632_v29 = vadd.f32 %v728_v8, %v610_v63  ;;  %v633_v30 = vadd.f32 %v728_v8, %v611_v43  ;;  %v634_v50 = vadd.f32 %v728_v8, %v612_v5 }
 0x275   :  { %v772_v49 = vpop.eup %771  ;;  %v635_v59 = vadd.f32 %v728_v8, %v613_v47  ;;  %v637_v60 = vadd.f32 %v728_v8, %v615_v48 }
 0x276   :  { %v662_v37 = vrot.slane %v631_v45, 7  ;;  %v664_v53 = vrot.slane %v632_v29, 6  ;;  %v563_v19 = vrot.slane %v772_v49, 1  ;;  %v564_v31 = vrot.slane %v772_v49, 2 }
 0x277   :  { %v565_v32 = vrot.slane %v772_v49, 3  ;;  %v566_v33 = vrot.slane %v772_v49, 4  ;;  %v567_v34 = vrot.slane %v772_v49, 5  ;;  %v568_v35 = vrot.slane %v772_v49, 6 }
 0x278   :  { %v569_v36 = vrot.slane %v772_v49, 7  ;;  %v594_v38 = vmul.f32 %v772_v49, %v1061_v17  ;;  %v595_v39 = vmul.f32 %v563_v19, %v1064_v21  ;;  %v596_v40 = vmul.f32 %v564_v31, %v1067_v20 }
 0x279   :  { %v597_v42 = vmul.f32 %v565_v32, %v1071_v23  ;;  %v598_v44 = vmul.f32 %v566_v33, %v1074_v24  ;;  %v599_v51 = vmul.f32 %v567_v34, %v1077_v25  ;;  %v600_v0 = vmul.f32 %v568_v35, %v1080_v28 }
 0x27a   :  { %v601_v7 = vmul.f32 %v569_v36, %v1082_v52  ;;  %v616_v54 = vmul.f32 %v727_v62, %v594_v38  ;;  %v617_v55 = vmul.f32 %v727_v62, %v595_v39  ;;  %v618_v56 = vmul.f32 %v727_v62, %v596_v40 }
 0x27b   :  { %v619_v57 = vmul.f32 %v727_v62, %v597_v42  ;;  %v620_v58 = vmul.f32 %v727_v62, %v598_v44  ;;  %v621_v17 = vmul.f32 %v727_v62, %v599_v51  ;;  %v636_v21 = vadd.f32 %v728_v8, %v614_v26 }
 0x27c   :  { %v622_v20 = vmul.f32 %v727_v62, %v600_v0  ;;  %v623_v61 = vmul.f32 %v727_v62, %v601_v7  ;;  %v639_v23 = vadd.f32 %v728_v8, %v617_v55  ;;  %v640_v1 = vadd.f32 %v728_v8, %v618_v56 }
 0x27d   :  { %v641_v24 = vadd.f32 %v728_v8, %v619_v57  ;;  %v663_v25 = vsel %vm399_vm2, %v662_v37, %v630_v18  ;;  %v666_v3 = vrot.slane %v633_v30, 5  ;;  %v668_v28 = vrot.slane %v634_v50, 4 }
 0x27e   :  { %v638_v4 = vadd.f32 %v728_v8, %v616_v54  ;;  %v642_v52 = vadd.f32 %v728_v8, %v620_v58  ;;  %v643_v6 = vadd.f32 %v728_v8, %v621_v17  ;;  %v665_v10 = vsel %vm401_vm3, %v664_v53, %v663_v25 }
 0x27f   :  { %v667_v11 = vsel %vm403_vm4, %v666_v3, %v665_v10  ;;  %v670_v12 = vrot.slane %v635_v59, 3  ;;  %v676_v13 = vrot.slane %v639_v23, 7  ;;  %v678_v14 = vrot.slane %v640_v1, 6 }
 0x280   :  { %v644_v15 = vadd.f32 %v728_v8, %v622_v20  ;;  %v645_v16 = vadd.f32 %v728_v8, %v623_v61  ;;  %v669_v62 = vsel %vm405_vm5, %v668_v28, %v667_v11  ;;  %v672_v22 = vrot.slane %v636_v21, 2 }
 0x281   :  { %v671_v46 = vsel %vm407_vm6, %v670_v12, %v669_v62  ;;  %v674_v27 = vrot.slane %v637_v60, 1  ;;  %v677_v2 = vsel %vm399_vm2, %v676_v13, %v638_v4  ;;  %v680_v9 = vrot.slane %v641_v24, 5 }
 0x282   :  { %v673_v41 = vsel %vm409_vm7, %v672_v22, %v671_v46  ;;  %v679_v63 = vsel %vm401_vm3, %v678_v14, %v677_v2  ;;  %v682_v43 = vrot.slane %v642_v52, 4  ;;  %v684_v29 = vrot.slane %v643_v6, 3 }
 0x283   :  { %v675_v5 = vsel %vm411_vm8, %v674_v27, %v673_v41  ;;  %v681_v45 = vsel %vm403_vm4, %v680_v9, %v679_v63  ;;  %v686_v47 = vrot.slane %v644_v15, 2  ;;  %v688_v48 = vrot.slane %v645_v16, 1 }
 0x284   :  { %v683_v8 = vsel %vm405_vm5, %v682_v43, %v681_v45  ;;  %692 = vst.msk [vmem:[#allocation2] sm:$0xff] %vm422_vm9, %v675_v5 }
 0x285   :  { %v685_v26 = vsel %vm407_vm6, %v684_v29, %v683_v8 }
 0x286   :  { %v687_v18 = vsel %vm409_vm7, %v686_v47, %v685_v26 }
 0x287   :  { %v689_v49 = vsel %vm411_vm8, %v688_v48, %v687_v18 }
 0x288   :  { %693 = vst.msk [vmem:[#allocation2 + $0x8] sm:$0xff] %vm422_vm9, %v689_v49 }
 0x289   :  { %784 = shalt.err (!%p781_p4)
}
 0x28a   :  { %s785_s30 = scalar_lea.hbm %s1166_s5, 256 }
 0x28b   :  { %p786_p5 = scmp.ne.s32.totalorder %s1166_s5, %s785_s30  ;;  %p789_p6 = scmp.lt.u32.totalorder %s785_s30, %s1166_s5 }
 0x28d   :  { %p791_p7 = pnand %p789_p6, %p786_p5 }
 0x28f   :  { %794 = shalt.err (!%p791_p7)
}
 0x290   :  { %s799_s9 = smov 128   ;;  %s800_s10 = smov 8  }
 0x291   :  { %705 = dma.vmem_to_hbm [thread:$0]  %s700_s26, 256, %s1166_s5, [#allocation3], %s799_s9, %s799_s9, %s800_s10  }
 0x292   :  { %795 = dma.done.wait [#allocation3], 256  }
 0x293   :  { %796 = vsyncadd [#allocation3], 4294967040 }
 0x294   :  { %709 = vsyncpa [#allocation3], 1 }

</bundles_post_ra>
